<compile_context>
chip_gen: v6e
topology: v6e:2x2x1
jax: 0.10.0
libtpu: 0.0.40
codegen_flags: <defaults>
</compile_context>

<pallas_src>
import functools

import jax
import jax.numpy as jnp
from jax.experimental import pallas as pl
from jax.experimental.pallas import tpu as pltpu


def _down_layers_kernel(x_ref, s_ref, w1_ref, a1_ref, c1_ref,
                        w2_ref, a2_ref, c2_ref, o_ref,
                        *, H, W, C_in, C_out):
    f32 = jnp.float32
    Wp = W // 2
    Pp = (H // 2) * Wp

    def shift_flat(a, s):
        # b[:, p] = a[:, p + s] if 0 <= p + s < P else 0   (s static)
        if s == 0:
            return a
        rows = a.shape[0]
        zeros = jnp.zeros((rows, abs(s)), dtype=a.dtype)
        if s > 0:
            return jnp.concatenate([a[:, s:], zeros], axis=1)
        return jnp.concatenate([zeros, a[:, :s]], axis=1)

    # ---------------- MaxPool2d(2) in flat pixel space ----------------
    x = x_ref[0].astype(f32)                              # (C_in, H*W)
    t = jnp.maximum(x, shift_flat(x, 1))                  # pair along W
    u = jnp.maximum(t, shift_flat(t, W))                  # pair along H
    # Compact even/even positions with a constant one-hot matrix (MXU).
    pooled = jnp.dot(u, s_ref[...].astype(f32),
                     preferred_element_type=f32)          # (C_in, Pp)

    # Column index of each pooled pixel, for zero-padding at the W edges.
    col = jax.lax.broadcasted_iota(jnp.int32, (1, Pp), 1) % Wp

    def conv3x3(feat, w_ref_):
        acc = jnp.zeros((C_out, Pp), f32)
        k = 0
        for dy in (-1, 0, 1):
            for dx in (-1, 0, 1):
                tap = shift_flat(feat, dy * Wp + dx)
                if dx != 0:
                    ok = jnp.logical_and(col + dx >= 0, col + dx < Wp)
                    tap = jnp.where(ok, tap, 0.0)
                acc = acc + jnp.dot(w_ref_[k].astype(f32), tap,
                                    preferred_element_type=f32)
                k += 1
        return acc

    # ------------- Conv3x3 -> BN(eval, folded) -> ReLU, twice -------------
    h = conv3x3(pooled, w1_ref)
    h = jnp.maximum(h * a1_ref[...] + c1_ref[...], 0.0)
    h = conv3x3(h, w2_ref)
    h = jnp.maximum(h * a2_ref[...] + c2_ref[...], 0.0)

    o_ref[0] = h.astype(o_ref.dtype)


def down_layers_forward(x, w1, b1, g1, beta1, rm1, rv1,
                        w2, b2, g2, beta2, rm2, rv2, *, eps=1e-5):
    """x: (N, C_in, H, W); convs are (C_out, C_*, 3, 3); BN params are (C_out,)."""
    N, C_in, H, W = x.shape
    C_out = w1.shape[0]
    assert H % 2 == 0 and W % 2 == 0
    Hp, Wp = H // 2, W // 2
    P0, Pp = H * W, Hp * Wp

    # Free HBM reshape: collapse trailing spatial dims (no transpose, no pad).
    x_flat = x.reshape(N, C_in, P0)

    # One-hot compaction matrix for the 2x2 max pool (even row, even col).
    q = jnp.arange(Pp, dtype=jnp.int32)
    src = (q // Wp) * 2 * W + (q % Wp) * 2
    s_pool = (jnp.arange(P0, dtype=jnp.int32)[:, None] == src[None, :]
              ).astype(jnp.float32)                       # (P0, Pp)

    # 3x3 taps reorganized as (9, C_out, C_in/out) — tiny host-side reshape.
    w1_t = jnp.transpose(w1.reshape(C_out, C_in, 9), (2, 0, 1)).astype(jnp.float32)
    w2_t = jnp.transpose(w2.reshape(C_out, C_out, 9), (2, 0, 1)).astype(jnp.float32)

    # Fold conv bias + BatchNorm (eval) into one per-channel scale/shift.
    a1 = g1 / jnp.sqrt(rv1 + eps)
    c1 = beta1 + (b1 - rm1) * a1
    a2 = g2 / jnp.sqrt(rv2 + eps)
    c2 = beta2 + (b2 - rm2) * a2
    a1 = a1.reshape(C_out, 1).astype(jnp.float32)
    c1 = c1.reshape(C_out, 1).astype(jnp.float32)
    a2 = a2.reshape(C_out, 1).astype(jnp.float32)
    c2 = c2.reshape(C_out, 1).astype(jnp.float32)

    kernel = functools.partial(_down_layers_kernel,
                               H=H, W=W, C_in=C_in, C_out=C_out)

    flops = int(N * (2 * C_in * P0 * Pp            # pooling compaction matmul
                     + 2 * 9 * C_in * C_out * Pp   # conv1
                     + 2 * 9 * C_out * C_out * Pp))  # conv2
    bytes_accessed = int(4 * (N * C_in * P0 + N * C_out * Pp + P0 * Pp
                              + 9 * C_out * C_in + 9 * C_out * C_out
                              + 4 * C_out))

    y_flat = pl.pallas_call(
        kernel,
        out_shape=jax.ShapeDtypeStruct((N, C_out, Pp), x.dtype),
        grid=(N,),
        in_specs=[
            pl.BlockSpec((1, C_in, P0), lambda i: (i, 0, 0)),      # activations
            pl.BlockSpec((P0, Pp), lambda i: (0, 0)),              # pool matrix
            pl.BlockSpec((9, C_out, C_in), lambda i: (0, 0, 0)),   # conv1 taps
            pl.BlockSpec((C_out, 1), lambda i: (0, 0)),            # scale1
            pl.BlockSpec((C_out, 1), lambda i: (0, 0)),            # shift1
            pl.BlockSpec((9, C_out, C_out), lambda i: (0, 0, 0)),  # conv2 taps
            pl.BlockSpec((C_out, 1), lambda i: (0, 0)),            # scale2
            pl.BlockSpec((C_out, 1), lambda i: (0, 0)),            # shift2
        ],
        out_specs=pl.BlockSpec((1, C_out, Pp), lambda i: (i, 0, 0)),
        compiler_params=pltpu.CompilerParams(
            dimension_semantics=("parallel",),        # shards batch over v7x's 2 TCs
            vmem_limit_bytes=32 * 1024 * 1024,        # safe on v5e/v6e/v7x
        ),
        cost_estimate=pl.CostEstimate(flops=flops, transcendentals=0,
                                      bytes_accessed=bytes_accessed),
    )(x_flat, s_pool, w1_t, a1, c1, w2_t, a2, c2)

    # Free HBM reshape back to NCHW spatial.
    return y_flat.reshape(N, C_out, Hp, Wp)


if __name__ == "__main__":
    in_ch, out_ch = 4, 8
    N, H, W = 2, 16, 16
    eps = 1e-5

    key = jax.random.PRNGKey(0)
    keys = jax.random.split(key, 12)

    x = jax.random.normal(keys[0], (N, in_ch, H, W), dtype=jnp.float32)

    def conv_init(kw, kb, co, ci):
        bound = 1.0 / (ci * 9) ** 0.5          # PyTorch default: U(-1/sqrt(fan_in), ...)
        w = jax.random.uniform(kw, (co, ci, 3, 3), jnp.float32, -bound, bound)
        b = jax.random.uniform(kb, (co,), jnp.float32, -bound, bound)
        return w, b

    w1, b1 = conv_init(keys[1], keys[2], out_ch, in_ch)
    w2, b2 = conv_init(keys[3], keys[4], out_ch, out_ch)

    # BatchNorm2d (eval-mode) parameters — randomized to exercise the folding.
    g1 = jax.random.uniform(keys[5], (out_ch,), jnp.float32, 0.5, 1.5)
    be1 = 0.1 * jax.random.normal(keys[6], (out_ch,), jnp.float32)
    rm1 = 0.1 * jax.random.normal(keys[7], (out_ch,), jnp.float32)
    rv1 = jax.random.uniform(keys[8], (out_ch,), jnp.float32, 0.5, 1.5)
    g2 = jax.random.uniform(keys[9], (out_ch,), jnp.float32, 0.5, 1.5)
    be2 = 0.1 * jax.random.normal(keys[10], (out_ch,), jnp.float32)
    rm2 = 0.1 * jax.random.normal(keys[11], (out_ch,), jnp.float32)
    rv2 = jnp.ones((out_ch,), jnp.float32)

    y = down_layers_forward(x, w1, b1, g1, be1, rm1, rv1,
                            w2, b2, g2, be2, rm2, rv2, eps=eps)
    y = jax.block_until_ready(y)

    # -------- pure-JAX reference (MaxPool2d(2) + double_conv, BN eval) --------
    def ref_forward(xx):
        n_, c_, h_, w_ = xx.shape
        xp = xx.reshape(n_, c_, h_ // 2, 2, w_ // 2, 2).max(axis=(3, 5))

        def block(z, w, b, g, be, rm, rv):
            yy = jax.lax.conv_general_dilated(
                z, w, window_strides=(1, 1), padding=((1, 1), (1, 1)),
                dimension_numbers=("NCHW", "OIHW", "NCHW"))
            yy = yy + b[None, :, None, None]
            yy = (yy - rm[None, :, None, None]) / jnp.sqrt(rv[None, :, None, None] + eps)
            yy = yy * g[None, :, None, None] + be[None, :, None, None]
            return jnp.maximum(yy, 0.0)

        h1 = block(xp, w1, b1, g1, be1, rm1, rv1)
        return block(h1, w2, b2, g2, be2, rm2, rv2)

    y_ref = ref_forward(x)
    assert y.shape == (N, out_ch, H // 2, W // 2)
    max_err = float(jnp.max(jnp.abs(y - y_ref)))
    assert jnp.allclose(y, y_ref, atol=1e-4, rtol=1e-4), f"mismatch vs reference: {max_err}"

    print("KERNEL_OK")
</pallas_src>

<mosaic_0001>
module attributes {stable_mosaic.version = 11 : i64} {
  func.func @_down_layers_kernel(%arg0: i32, %arg1: memref<1x4x256xf32, #tpu.memory_space<vmem>>, %arg2: memref<256x64xf32, #tpu.memory_space<vmem>>, %arg3: memref<9x8x4xf32, #tpu.memory_space<vmem>>, %arg4: memref<8x1xf32, #tpu.memory_space<vmem>>, %arg5: memref<8x1xf32, #tpu.memory_space<vmem>>, %arg6: memref<9x8x8xf32, #tpu.memory_space<vmem>>, %arg7: memref<8x1xf32, #tpu.memory_space<vmem>>, %arg8: memref<8x1xf32, #tpu.memory_space<vmem>>, %arg9: memref<1x8x64xf32, #tpu.memory_space<vmem>>) attributes {dimension_semantics = [#tpu.dimension_semantics<parallel>], iteration_bounds = array<i64: 2>, scalar_prefetch = 0 : i64, scratch_operands = 0 : i64, tpu.core_type = #tpu.core_type<tc>, window_params = [{transform_indices = @transform_0, window_bounds = array<i64: 1, 4, 256>}, {pipeline_mode = #tpu.pipeline_mode<synchronous>, transform_indices = @transform_1, window_bounds = array<i64: 256, 64>}, {pipeline_mode = #tpu.pipeline_mode<synchronous>, transform_indices = @transform_2, window_bounds = array<i64: 9, 8, 4>}, {pipeline_mode = #tpu.pipeline_mode<synchronous>, transform_indices = @transform_3, window_bounds = array<i64: 8, 1>}, {pipeline_mode = #tpu.pipeline_mode<synchronous>, transform_indices = @transform_4, window_bounds = array<i64: 8, 1>}, {pipeline_mode = #tpu.pipeline_mode<synchronous>, transform_indices = @transform_5, window_bounds = array<i64: 9, 8, 8>}, {pipeline_mode = #tpu.pipeline_mode<synchronous>, transform_indices = @transform_6, window_bounds = array<i64: 8, 1>}, {pipeline_mode = #tpu.pipeline_mode<synchronous>, transform_indices = @transform_7, window_bounds = array<i64: 8, 1>}, {transform_indices = @transform_8, window_bounds = array<i64: 1, 8, 64>}]} {
    %c0 = arith.constant 0 : index
    %c0_0 = arith.constant 0 : index
    %c0_1 = arith.constant 0 : index
    %0 = vector.load %arg1[%c0, %c0_0, %c0_1] : memref<1x4x256xf32, #tpu.memory_space<vmem>>, vector<1x4x256xf32>
    %1 = vector.shape_cast %0 : vector<1x4x256xf32> to vector<4x256xf32>
    %cst = arith.constant 0.000000e+00 : f32
    %2 = vector.broadcast %cst : f32 to vector<4x1xf32>
    %3 = vector.extract_strided_slice %1 {offsets = [0, 1], sizes = [4, 255], strides = [1, 1]} : vector<4x256xf32> to vector<4x255xf32>
    %4 = tpu.concatenate %3, %2 in 1 : vector<4x255xf32>, vector<4x1xf32> -> vector<4x256xf32>
    %5 = arith.maximumf %1, %4 : vector<4x256xf32>
    %cst_2 = arith.constant 0.000000e+00 : f32
    %6 = vector.broadcast %cst_2 : f32 to vector<4x16xf32>
    %7 = vector.extract_strided_slice %5 {offsets = [0, 16], sizes = [4, 240], strides = [1, 1]} : vector<4x256xf32> to vector<4x240xf32>
    %8 = tpu.concatenate %7, %6 in 1 : vector<4x240xf32>, vector<4x16xf32> -> vector<4x256xf32>
    %9 = arith.maximumf %5, %8 : vector<4x256xf32>
    %c0_3 = arith.constant 0 : index
    %c0_4 = arith.constant 0 : index
    %10 = vector.load %arg2[%c0_3, %c0_4] : memref<256x64xf32, #tpu.memory_space<vmem>>, vector<256x64xf32>
    %cst_5 = arith.constant dense<0.000000e+00> : vector<4x64xf32>
    %11 = tpu.matmul %9, %10, %cst_5 {dimension_numbers = #tpu.dot_dimension_numbers<[1], [0], [0], [1], [0, 0, 1, 1], [], []>} : vector<4x256xf32>, vector<256x64xf32>, vector<4x64xf32> -> vector<4x64xf32>
    %12 = tpu.iota {dimensions = array<i32: 1>} : vector<1x64xi32>
    %c8_i32 = arith.constant 8 : i32
    %c0_i32 = arith.constant 0 : i32
    %13 = arith.cmpi eq, %c8_i32, %c0_i32 : i32
    %c1_i32 = arith.constant 1 : i32
    %14 = arith.select %13, %c1_i32, %c8_i32 : i32
    %15 = vector.broadcast %14 : i32 to vector<1x64xi32>
    %16 = arith.remsi %12, %15 : vector<1x64xi32>
    %c0_i32_6 = arith.constant 0 : i32
    %17 = vector.broadcast %c0_i32_6 : i32 to vector<1x64xi32>
    %18 = arith.cmpi ne, %16, %17 : vector<1x64xi32>
    %c0_i32_7 = arith.constant 0 : i32
    %19 = vector.broadcast %c0_i32_7 : i32 to vector<1x64xi32>
    %20 = arith.cmpi slt, %16, %19 : vector<1x64xi32>
    %c0_i32_8 = arith.constant 0 : i32
    %21 = arith.cmpi slt, %14, %c0_i32_8 : i32
    %22 = vector.broadcast %21 : i1 to vector<1x64xi1>
    %23 = vector.broadcast %22 : vector<1x64xi1> to vector<1x64xi1>
    %24 = arith.xori %20, %23 : vector<1x64xi1>
    %25 = arith.andi %24, %18 : vector<1x64xi1>
    %26 = vector.broadcast %14 : i32 to vector<1x64xi32>
    %27 = arith.addi %16, %26 : vector<1x64xi32>
    %28 = arith.select %25, %27, %16 : vector<1x64xi1>, vector<1x64xi32>
    %cst_9 = arith.constant 0.000000e+00 : f32
    %29 = vector.broadcast %cst_9 : f32 to vector<8x64xf32>
    %cst_10 = arith.constant 0.000000e+00 : f32
    %30 = vector.broadcast %cst_10 : f32 to vector<4x9xf32>
    %31 = vector.extract_strided_slice %11 {offsets = [0, 0], sizes = [4, 55], strides = [1, 1]} : vector<4x64xf32> to vector<4x55xf32>
    %32 = tpu.concatenate %30, %31 in 1 : vector<4x9xf32>, vector<4x55xf32> -> vector<4x64xf32>
    %c-1_i32 = arith.constant -1 : i32
    %33 = vector.broadcast %c-1_i32 : i32 to vector<1x64xi32>
    %34 = arith.addi %28, %33 : vector<1x64xi32>
    %c0_i32_11 = arith.constant 0 : i32
    %35 = vector.broadcast %c0_i32_11 : i32 to vector<1x64xi32>
    %36 = arith.cmpi sge, %34, %35 : vector<1x64xi32>
    %c-1_i32_12 = arith.constant -1 : i32
    %37 = vector.broadcast %c-1_i32_12 : i32 to vector<1x64xi32>
    %38 = arith.addi %28, %37 : vector<1x64xi32>
    %c8_i32_13 = arith.constant 8 : i32
    %39 = vector.broadcast %c8_i32_13 : i32 to vector<1x64xi32>
    %40 = arith.cmpi slt, %38, %39 : vector<1x64xi32>
    %41 = arith.andi %36, %40 : vector<1x64xi1>
    %cst_14 = arith.constant 0.000000e+00 : f32
    %42 = vector.shape_cast %41 : vector<1x64xi1> to vector<1x64xi1>
    %43 = vector.broadcast %42 : vector<1x64xi1> to vector<4x64xi1>
    %44 = vector.broadcast %cst_14 : f32 to vector<4x64xf32>
    %45 = arith.select %43, %32, %44 : vector<4x64xi1>, vector<4x64xf32>
    %c0_15 = arith.constant 0 : index
    %c0_16 = arith.constant 0 : index
    %c0_17 = arith.constant 0 : index
    %46 = vector.load %arg3[%c0_15, %c0_16, %c0_17] : memref<9x8x4xf32, #tpu.memory_space<vmem>>, vector<1x8x4xf32>
    %47 = vector.shape_cast %46 : vector<1x8x4xf32> to vector<8x4xf32>
    %cst_18 = arith.constant dense<0.000000e+00> : vector<8x64xf32>
    %48 = tpu.matmul %47, %45, %cst_18 {dimension_numbers = #tpu.dot_dimension_numbers<[1], [0], [0], [1], [0, 0, 1, 1], [], []>} : vector<8x4xf32>, vector<4x64xf32>, vector<8x64xf32> -> vector<8x64xf32>
    %49 = arith.addf %29, %48 : vector<8x64xf32>
    %cst_19 = arith.constant 0.000000e+00 : f32
    %50 = vector.broadcast %cst_19 : f32 to vector<4x8xf32>
    %51 = vector.extract_strided_slice %11 {offsets = [0, 0], sizes = [4, 56], strides = [1, 1]} : vector<4x64xf32> to vector<4x56xf32>
    %52 = tpu.concatenate %50, %51 in 1 : vector<4x8xf32>, vector<4x56xf32> -> vector<4x64xf32>
    %c1 = arith.constant 1 : index
    %c0_20 = arith.constant 0 : index
    %c0_21 = arith.constant 0 : index
    %53 = vector.load %arg3[%c1, %c0_20, %c0_21] : memref<9x8x4xf32, #tpu.memory_space<vmem>>, vector<1x8x4xf32>
    %54 = vector.shape_cast %53 : vector<1x8x4xf32> to vector<8x4xf32>
    %cst_22 = arith.constant dense<0.000000e+00> : vector<8x64xf32>
    %55 = tpu.matmul %54, %52, %cst_22 {dimension_numbers = #tpu.dot_dimension_numbers<[1], [0], [0], [1], [0, 0, 1, 1], [], []>} : vector<8x4xf32>, vector<4x64xf32>, vector<8x64xf32> -> vector<8x64xf32>
    %56 = arith.addf %49, %55 : vector<8x64xf32>
    %cst_23 = arith.constant 0.000000e+00 : f32
    %57 = vector.broadcast %cst_23 : f32 to vector<4x7xf32>
    %58 = vector.extract_strided_slice %11 {offsets = [0, 0], sizes = [4, 57], strides = [1, 1]} : vector<4x64xf32> to vector<4x57xf32>
    %59 = tpu.concatenate %57, %58 in 1 : vector<4x7xf32>, vector<4x57xf32> -> vector<4x64xf32>
    %c1_i32_24 = arith.constant 1 : i32
    %60 = vector.broadcast %c1_i32_24 : i32 to vector<1x64xi32>
    %61 = arith.addi %28, %60 : vector<1x64xi32>
    %c0_i32_25 = arith.constant 0 : i32
    %62 = vector.broadcast %c0_i32_25 : i32 to vector<1x64xi32>
    %63 = arith.cmpi sge, %61, %62 : vector<1x64xi32>
    %c1_i32_26 = arith.constant 1 : i32
    %64 = vector.broadcast %c1_i32_26 : i32 to vector<1x64xi32>
    %65 = arith.addi %28, %64 : vector<1x64xi32>
    %c8_i32_27 = arith.constant 8 : i32
    %66 = vector.broadcast %c8_i32_27 : i32 to vector<1x64xi32>
    %67 = arith.cmpi slt, %65, %66 : vector<1x64xi32>
    %68 = arith.andi %63, %67 : vector<1x64xi1>
    %cst_28 = arith.constant 0.000000e+00 : f32
    %69 = vector.shape_cast %68 : vector<1x64xi1> to vector<1x64xi1>
    %70 = vector.broadcast %69 : vector<1x64xi1> to vector<4x64xi1>
    %71 = vector.broadcast %cst_28 : f32 to vector<4x64xf32>
    %72 = arith.select %70, %59, %71 : vector<4x64xi1>, vector<4x64xf32>
    %c2 = arith.constant 2 : index
    %c0_29 = arith.constant 0 : index
    %c0_30 = arith.constant 0 : index
    %73 = vector.load %arg3[%c2, %c0_29, %c0_30] : memref<9x8x4xf32, #tpu.memory_space<vmem>>, vector<1x8x4xf32>
    %74 = vector.shape_cast %73 : vector<1x8x4xf32> to vector<8x4xf32>
    %cst_31 = arith.constant dense<0.000000e+00> : vector<8x64xf32>
    %75 = tpu.matmul %74, %72, %cst_31 {dimension_numbers = #tpu.dot_dimension_numbers<[1], [0], [0], [1], [0, 0, 1, 1], [], []>} : vector<8x4xf32>, vector<4x64xf32>, vector<8x64xf32> -> vector<8x64xf32>
    %76 = arith.addf %56, %75 : vector<8x64xf32>
    %cst_32 = arith.constant 0.000000e+00 : f32
    %77 = vector.broadcast %cst_32 : f32 to vector<4x1xf32>
    %78 = vector.extract_strided_slice %11 {offsets = [0, 0], sizes = [4, 63], strides = [1, 1]} : vector<4x64xf32> to vector<4x63xf32>
    %79 = tpu.concatenate %77, %78 in 1 : vector<4x1xf32>, vector<4x63xf32> -> vector<4x64xf32>
    %c-1_i32_33 = arith.constant -1 : i32
    %80 = vector.broadcast %c-1_i32_33 : i32 to vector<1x64xi32>
    %81 = arith.addi %28, %80 : vector<1x64xi32>
    %c0_i32_34 = arith.constant 0 : i32
    %82 = vector.broadcast %c0_i32_34 : i32 to vector<1x64xi32>
    %83 = arith.cmpi sge, %81, %82 : vector<1x64xi32>
    %c-1_i32_35 = arith.constant -1 : i32
    %84 = vector.broadcast %c-1_i32_35 : i32 to vector<1x64xi32>
    %85 = arith.addi %28, %84 : vector<1x64xi32>
    %c8_i32_36 = arith.constant 8 : i32
    %86 = vector.broadcast %c8_i32_36 : i32 to vector<1x64xi32>
    %87 = arith.cmpi slt, %85, %86 : vector<1x64xi32>
    %88 = arith.andi %83, %87 : vector<1x64xi1>
    %cst_37 = arith.constant 0.000000e+00 : f32
    %89 = vector.shape_cast %88 : vector<1x64xi1> to vector<1x64xi1>
    %90 = vector.broadcast %89 : vector<1x64xi1> to vector<4x64xi1>
    %91 = vector.broadcast %cst_37 : f32 to vector<4x64xf32>
    %92 = arith.select %90, %79, %91 : vector<4x64xi1>, vector<4x64xf32>
    %c3 = arith.constant 3 : index
    %c0_38 = arith.constant 0 : index
    %c0_39 = arith.constant 0 : index
    %93 = vector.load %arg3[%c3, %c0_38, %c0_39] : memref<9x8x4xf32, #tpu.memory_space<vmem>>, vector<1x8x4xf32>
    %94 = vector.shape_cast %93 : vector<1x8x4xf32> to vector<8x4xf32>
    %cst_40 = arith.constant dense<0.000000e+00> : vector<8x64xf32>
    %95 = tpu.matmul %94, %92, %cst_40 {dimension_numbers = #tpu.dot_dimension_numbers<[1], [0], [0], [1], [0, 0, 1, 1], [], []>} : vector<8x4xf32>, vector<4x64xf32>, vector<8x64xf32> -> vector<8x64xf32>
    %96 = arith.addf %76, %95 : vector<8x64xf32>
    %c4 = arith.constant 4 : index
    %c0_41 = arith.constant 0 : index
    %c0_42 = arith.constant 0 : index
    %97 = vector.load %arg3[%c4, %c0_41, %c0_42] : memref<9x8x4xf32, #tpu.memory_space<vmem>>, vector<1x8x4xf32>
    %98 = vector.shape_cast %97 : vector<1x8x4xf32> to vector<8x4xf32>
    %cst_43 = arith.constant dense<0.000000e+00> : vector<8x64xf32>
    %99 = tpu.matmul %98, %11, %cst_43 {dimension_numbers = #tpu.dot_dimension_numbers<[1], [0], [0], [1], [0, 0, 1, 1], [], []>} : vector<8x4xf32>, vector<4x64xf32>, vector<8x64xf32> -> vector<8x64xf32>
    %100 = arith.addf %96, %99 : vector<8x64xf32>
    %cst_44 = arith.constant 0.000000e+00 : f32
    %101 = vector.broadcast %cst_44 : f32 to vector<4x1xf32>
    %102 = vector.extract_strided_slice %11 {offsets = [0, 1], sizes = [4, 63], strides = [1, 1]} : vector<4x64xf32> to vector<4x63xf32>
    %103 = tpu.concatenate %102, %101 in 1 : vector<4x63xf32>, vector<4x1xf32> -> vector<4x64xf32>
    %c1_i32_45 = arith.constant 1 : i32
    %104 = vector.broadcast %c1_i32_45 : i32 to vector<1x64xi32>
    %105 = arith.addi %28, %104 : vector<1x64xi32>
    %c0_i32_46 = arith.constant 0 : i32
    %106 = vector.broadcast %c0_i32_46 : i32 to vector<1x64xi32>
    %107 = arith.cmpi sge, %105, %106 : vector<1x64xi32>
    %c1_i32_47 = arith.constant 1 : i32
    %108 = vector.broadcast %c1_i32_47 : i32 to vector<1x64xi32>
    %109 = arith.addi %28, %108 : vector<1x64xi32>
    %c8_i32_48 = arith.constant 8 : i32
    %110 = vector.broadcast %c8_i32_48 : i32 to vector<1x64xi32>
    %111 = arith.cmpi slt, %109, %110 : vector<1x64xi32>
    %112 = arith.andi %107, %111 : vector<1x64xi1>
    %cst_49 = arith.constant 0.000000e+00 : f32
    %113 = vector.shape_cast %112 : vector<1x64xi1> to vector<1x64xi1>
    %114 = vector.broadcast %113 : vector<1x64xi1> to vector<4x64xi1>
    %115 = vector.broadcast %cst_49 : f32 to vector<4x64xf32>
    %116 = arith.select %114, %103, %115 : vector<4x64xi1>, vector<4x64xf32>
    %c5 = arith.constant 5 : index
    %c0_50 = arith.constant 0 : index
    %c0_51 = arith.constant 0 : index
    %117 = vector.load %arg3[%c5, %c0_50, %c0_51] : memref<9x8x4xf32, #tpu.memory_space<vmem>>, vector<1x8x4xf32>
    %118 = vector.shape_cast %117 : vector<1x8x4xf32> to vector<8x4xf32>
    %cst_52 = arith.constant dense<0.000000e+00> : vector<8x64xf32>
    %119 = tpu.matmul %118, %116, %cst_52 {dimension_numbers = #tpu.dot_dimension_numbers<[1], [0], [0], [1], [0, 0, 1, 1], [], []>} : vector<8x4xf32>, vector<4x64xf32>, vector<8x64xf32> -> vector<8x64xf32>
    %120 = arith.addf %100, %119 : vector<8x64xf32>
    %cst_53 = arith.constant 0.000000e+00 : f32
    %121 = vector.broadcast %cst_53 : f32 to vector<4x7xf32>
    %122 = vector.extract_strided_slice %11 {offsets = [0, 7], sizes = [4, 57], strides = [1, 1]} : vector<4x64xf32> to vector<4x57xf32>
    %123 = tpu.concatenate %122, %121 in 1 : vector<4x57xf32>, vector<4x7xf32> -> vector<4x64xf32>
    %c-1_i32_54 = arith.constant -1 : i32
    %124 = vector.broadcast %c-1_i32_54 : i32 to vector<1x64xi32>
    %125 = arith.addi %28, %124 : vector<1x64xi32>
    %c0_i32_55 = arith.constant 0 : i32
    %126 = vector.broadcast %c0_i32_55 : i32 to vector<1x64xi32>
    %127 = arith.cmpi sge, %125, %126 : vector<1x64xi32>
    %c-1_i32_56 = arith.constant -1 : i32
    %128 = vector.broadcast %c-1_i32_56 : i32 to vector<1x64xi32>
    %129 = arith.addi %28, %128 : vector<1x64xi32>
    %c8_i32_57 = arith.constant 8 : i32
    %130 = vector.broadcast %c8_i32_57 : i32 to vector<1x64xi32>
    %131 = arith.cmpi slt, %129, %130 : vector<1x64xi32>
    %132 = arith.andi %127, %131 : vector<1x64xi1>
    %cst_58 = arith.constant 0.000000e+00 : f32
    %133 = vector.shape_cast %132 : vector<1x64xi1> to vector<1x64xi1>
    %134 = vector.broadcast %133 : vector<1x64xi1> to vector<4x64xi1>
    %135 = vector.broadcast %cst_58 : f32 to vector<4x64xf32>
    %136 = arith.select %134, %123, %135 : vector<4x64xi1>, vector<4x64xf32>
    %c6 = arith.constant 6 : index
    %c0_59 = arith.constant 0 : index
    %c0_60 = arith.constant 0 : index
    %137 = vector.load %arg3[%c6, %c0_59, %c0_60] : memref<9x8x4xf32, #tpu.memory_space<vmem>>, vector<1x8x4xf32>
    %138 = vector.shape_cast %137 : vector<1x8x4xf32> to vector<8x4xf32>
    %cst_61 = arith.constant dense<0.000000e+00> : vector<8x64xf32>
    %139 = tpu.matmul %138, %136, %cst_61 {dimension_numbers = #tpu.dot_dimension_numbers<[1], [0], [0], [1], [0, 0, 1, 1], [], []>} : vector<8x4xf32>, vector<4x64xf32>, vector<8x64xf32> -> vector<8x64xf32>
    %140 = arith.addf %120, %139 : vector<8x64xf32>
    %cst_62 = arith.constant 0.000000e+00 : f32
    %141 = vector.broadcast %cst_62 : f32 to vector<4x8xf32>
    %142 = vector.extract_strided_slice %11 {offsets = [0, 8], sizes = [4, 56], strides = [1, 1]} : vector<4x64xf32> to vector<4x56xf32>
    %143 = tpu.concatenate %142, %141 in 1 : vector<4x56xf32>, vector<4x8xf32> -> vector<4x64xf32>
    %c7 = arith.constant 7 : index
    %c0_63 = arith.constant 0 : index
    %c0_64 = arith.constant 0 : index
    %144 = vector.load %arg3[%c7, %c0_63, %c0_64] : memref<9x8x4xf32, #tpu.memory_space<vmem>>, vector<1x8x4xf32>
    %145 = vector.shape_cast %144 : vector<1x8x4xf32> to vector<8x4xf32>
    %cst_65 = arith.constant dense<0.000000e+00> : vector<8x64xf32>
    %146 = tpu.matmul %145, %143, %cst_65 {dimension_numbers = #tpu.dot_dimension_numbers<[1], [0], [0], [1], [0, 0, 1, 1], [], []>} : vector<8x4xf32>, vector<4x64xf32>, vector<8x64xf32> -> vector<8x64xf32>
    %147 = arith.addf %140, %146 : vector<8x64xf32>
    %cst_66 = arith.constant 0.000000e+00 : f32
    %148 = vector.broadcast %cst_66 : f32 to vector<4x9xf32>
    %149 = vector.extract_strided_slice %11 {offsets = [0, 9], sizes = [4, 55], strides = [1, 1]} : vector<4x64xf32> to vector<4x55xf32>
    %150 = tpu.concatenate %149, %148 in 1 : vector<4x55xf32>, vector<4x9xf32> -> vector<4x64xf32>
    %c1_i32_67 = arith.constant 1 : i32
    %151 = vector.broadcast %c1_i32_67 : i32 to vector<1x64xi32>
    %152 = arith.addi %28, %151 : vector<1x64xi32>
    %c0_i32_68 = arith.constant 0 : i32
    %153 = vector.broadcast %c0_i32_68 : i32 to vector<1x64xi32>
    %154 = arith.cmpi sge, %152, %153 : vector<1x64xi32>
    %c1_i32_69 = arith.constant 1 : i32
    %155 = vector.broadcast %c1_i32_69 : i32 to vector<1x64xi32>
    %156 = arith.addi %28, %155 : vector<1x64xi32>
    %c8_i32_70 = arith.constant 8 : i32
    %157 = vector.broadcast %c8_i32_70 : i32 to vector<1x64xi32>
    %158 = arith.cmpi slt, %156, %157 : vector<1x64xi32>
    %159 = arith.andi %154, %158 : vector<1x64xi1>
    %cst_71 = arith.constant 0.000000e+00 : f32
    %160 = vector.shape_cast %159 : vector<1x64xi1> to vector<1x64xi1>
    %161 = vector.broadcast %160 : vector<1x64xi1> to vector<4x64xi1>
    %162 = vector.broadcast %cst_71 : f32 to vector<4x64xf32>
    %163 = arith.select %161, %150, %162 : vector<4x64xi1>, vector<4x64xf32>
    %c8 = arith.constant 8 : index
    %c0_72 = arith.constant 0 : index
    %c0_73 = arith.constant 0 : index
    %164 = vector.load %arg3[%c8, %c0_72, %c0_73] : memref<9x8x4xf32, #tpu.memory_space<vmem>>, vector<1x8x4xf32>
    %165 = vector.shape_cast %164 : vector<1x8x4xf32> to vector<8x4xf32>
    %cst_74 = arith.constant dense<0.000000e+00> : vector<8x64xf32>
    %166 = tpu.matmul %165, %163, %cst_74 {dimension_numbers = #tpu.dot_dimension_numbers<[1], [0], [0], [1], [0, 0, 1, 1], [], []>} : vector<8x4xf32>, vector<4x64xf32>, vector<8x64xf32> -> vector<8x64xf32>
    %167 = arith.addf %147, %166 : vector<8x64xf32>
    %c0_75 = arith.constant 0 : index
    %c0_76 = arith.constant 0 : index
    %168 = vector.load %arg4[%c0_75, %c0_76] : memref<8x1xf32, #tpu.memory_space<vmem>>, vector<8x1xf32>
    %169 = vector.broadcast %168 : vector<8x1xf32> to vector<8x64xf32>
    %170 = arith.mulf %167, %169 : vector<8x64xf32>
    %c0_77 = arith.constant 0 : index
    %c0_78 = arith.constant 0 : index
    %171 = vector.load %arg5[%c0_77, %c0_78] : memref<8x1xf32, #tpu.memory_space<vmem>>, vector<8x1xf32>
    %172 = vector.broadcast %171 : vector<8x1xf32> to vector<8x64xf32>
    %173 = arith.addf %170, %172 : vector<8x64xf32>
    %cst_79 = arith.constant 0.000000e+00 : f32
    %174 = vector.broadcast %cst_79 : f32 to vector<8x64xf32>
    %175 = arith.maximumf %173, %174 : vector<8x64xf32>
    %cst_80 = arith.constant 0.000000e+00 : f32
    %176 = vector.broadcast %cst_80 : f32 to vector<8x64xf32>
    %cst_81 = arith.constant 0.000000e+00 : f32
    %177 = vector.broadcast %cst_81 : f32 to vector<8x9xf32>
    %178 = vector.extract_strided_slice %175 {offsets = [0, 0], sizes = [8, 55], strides = [1, 1]} : vector<8x64xf32> to vector<8x55xf32>
    %179 = tpu.concatenate %177, %178 in 1 : vector<8x9xf32>, vector<8x55xf32> -> vector<8x64xf32>
    %c-1_i32_82 = arith.constant -1 : i32
    %180 = vector.broadcast %c-1_i32_82 : i32 to vector<1x64xi32>
    %181 = arith.addi %28, %180 : vector<1x64xi32>
    %c0_i32_83 = arith.constant 0 : i32
    %182 = vector.broadcast %c0_i32_83 : i32 to vector<1x64xi32>
    %183 = arith.cmpi sge, %181, %182 : vector<1x64xi32>
    %c-1_i32_84 = arith.constant -1 : i32
    %184 = vector.broadcast %c-1_i32_84 : i32 to vector<1x64xi32>
    %185 = arith.addi %28, %184 : vector<1x64xi32>
    %c8_i32_85 = arith.constant 8 : i32
    %186 = vector.broadcast %c8_i32_85 : i32 to vector<1x64xi32>
    %187 = arith.cmpi slt, %185, %186 : vector<1x64xi32>
    %188 = arith.andi %183, %187 : vector<1x64xi1>
    %cst_86 = arith.constant 0.000000e+00 : f32
    %189 = vector.shape_cast %188 : vector<1x64xi1> to vector<1x64xi1>
    %190 = vector.broadcast %189 : vector<1x64xi1> to vector<8x64xi1>
    %191 = vector.broadcast %cst_86 : f32 to vector<8x64xf32>
    %192 = arith.select %190, %179, %191 : vector<8x64xi1>, vector<8x64xf32>
    %c0_87 = arith.constant 0 : index
    %c0_88 = arith.constant 0 : index
    %c0_89 = arith.constant 0 : index
    %193 = vector.load %arg6[%c0_87, %c0_88, %c0_89] : memref<9x8x8xf32, #tpu.memory_space<vmem>>, vector<1x8x8xf32>
    %194 = vector.shape_cast %193 : vector<1x8x8xf32> to vector<8x8xf32>
    %cst_90 = arith.constant dense<0.000000e+00> : vector<8x64xf32>
    %195 = tpu.matmul %194, %192, %cst_90 {dimension_numbers = #tpu.dot_dimension_numbers<[1], [0], [0], [1], [0, 0, 1, 1], [], []>} : vector<8x8xf32>, vector<8x64xf32>, vector<8x64xf32> -> vector<8x64xf32>
    %196 = arith.addf %176, %195 : vector<8x64xf32>
    %cst_91 = arith.constant 0.000000e+00 : f32
    %197 = vector.broadcast %cst_91 : f32 to vector<8x8xf32>
    %198 = vector.extract_strided_slice %175 {offsets = [0, 0], sizes = [8, 56], strides = [1, 1]} : vector<8x64xf32> to vector<8x56xf32>
    %199 = tpu.concatenate %197, %198 in 1 : vector<8x8xf32>, vector<8x56xf32> -> vector<8x64xf32>
    %c1_92 = arith.constant 1 : index
    %c0_93 = arith.constant 0 : index
    %c0_94 = arith.constant 0 : index
    %200 = vector.load %arg6[%c1_92, %c0_93, %c0_94] : memref<9x8x8xf32, #tpu.memory_space<vmem>>, vector<1x8x8xf32>
    %201 = vector.shape_cast %200 : vector<1x8x8xf32> to vector<8x8xf32>
    %cst_95 = arith.constant dense<0.000000e+00> : vector<8x64xf32>
    %202 = tpu.matmul %201, %199, %cst_95 {dimension_numbers = #tpu.dot_dimension_numbers<[1], [0], [0], [1], [0, 0, 1, 1], [], []>} : vector<8x8xf32>, vector<8x64xf32>, vector<8x64xf32> -> vector<8x64xf32>
    %203 = arith.addf %196, %202 : vector<8x64xf32>
    %cst_96 = arith.constant 0.000000e+00 : f32
    %204 = vector.broadcast %cst_96 : f32 to vector<8x7xf32>
    %205 = vector.extract_strided_slice %175 {offsets = [0, 0], sizes = [8, 57], strides = [1, 1]} : vector<8x64xf32> to vector<8x57xf32>
    %206 = tpu.concatenate %204, %205 in 1 : vector<8x7xf32>, vector<8x57xf32> -> vector<8x64xf32>
    %c1_i32_97 = arith.constant 1 : i32
    %207 = vector.broadcast %c1_i32_97 : i32 to vector<1x64xi32>
    %208 = arith.addi %28, %207 : vector<1x64xi32>
    %c0_i32_98 = arith.constant 0 : i32
    %209 = vector.broadcast %c0_i32_98 : i32 to vector<1x64xi32>
    %210 = arith.cmpi sge, %208, %209 : vector<1x64xi32>
    %c1_i32_99 = arith.constant 1 : i32
    %211 = vector.broadcast %c1_i32_99 : i32 to vector<1x64xi32>
    %212 = arith.addi %28, %211 : vector<1x64xi32>
    %c8_i32_100 = arith.constant 8 : i32
    %213 = vector.broadcast %c8_i32_100 : i32 to vector<1x64xi32>
    %214 = arith.cmpi slt, %212, %213 : vector<1x64xi32>
    %215 = arith.andi %210, %214 : vector<1x64xi1>
    %cst_101 = arith.constant 0.000000e+00 : f32
    %216 = vector.shape_cast %215 : vector<1x64xi1> to vector<1x64xi1>
    %217 = vector.broadcast %216 : vector<1x64xi1> to vector<8x64xi1>
    %218 = vector.broadcast %cst_101 : f32 to vector<8x64xf32>
    %219 = arith.select %217, %206, %218 : vector<8x64xi1>, vector<8x64xf32>
    %c2_102 = arith.constant 2 : index
    %c0_103 = arith.constant 0 : index
    %c0_104 = arith.constant 0 : index
    %220 = vector.load %arg6[%c2_102, %c0_103, %c0_104] : memref<9x8x8xf32, #tpu.memory_space<vmem>>, vector<1x8x8xf32>
    %221 = vector.shape_cast %220 : vector<1x8x8xf32> to vector<8x8xf32>
    %cst_105 = arith.constant dense<0.000000e+00> : vector<8x64xf32>
    %222 = tpu.matmul %221, %219, %cst_105 {dimension_numbers = #tpu.dot_dimension_numbers<[1], [0], [0], [1], [0, 0, 1, 1], [], []>} : vector<8x8xf32>, vector<8x64xf32>, vector<8x64xf32> -> vector<8x64xf32>
    %223 = arith.addf %203, %222 : vector<8x64xf32>
    %cst_106 = arith.constant 0.000000e+00 : f32
    %224 = vector.broadcast %cst_106 : f32 to vector<8x1xf32>
    %225 = vector.extract_strided_slice %175 {offsets = [0, 0], sizes = [8, 63], strides = [1, 1]} : vector<8x64xf32> to vector<8x63xf32>
    %226 = tpu.concatenate %224, %225 in 1 : vector<8x1xf32>, vector<8x63xf32> -> vector<8x64xf32>
    %c-1_i32_107 = arith.constant -1 : i32
    %227 = vector.broadcast %c-1_i32_107 : i32 to vector<1x64xi32>
    %228 = arith.addi %28, %227 : vector<1x64xi32>
    %c0_i32_108 = arith.constant 0 : i32
    %229 = vector.broadcast %c0_i32_108 : i32 to vector<1x64xi32>
    %230 = arith.cmpi sge, %228, %229 : vector<1x64xi32>
    %c-1_i32_109 = arith.constant -1 : i32
    %231 = vector.broadcast %c-1_i32_109 : i32 to vector<1x64xi32>
    %232 = arith.addi %28, %231 : vector<1x64xi32>
    %c8_i32_110 = arith.constant 8 : i32
    %233 = vector.broadcast %c8_i32_110 : i32 to vector<1x64xi32>
    %234 = arith.cmpi slt, %232, %233 : vector<1x64xi32>
    %235 = arith.andi %230, %234 : vector<1x64xi1>
    %cst_111 = arith.constant 0.000000e+00 : f32
    %236 = vector.shape_cast %235 : vector<1x64xi1> to vector<1x64xi1>
    %237 = vector.broadcast %236 : vector<1x64xi1> to vector<8x64xi1>
    %238 = vector.broadcast %cst_111 : f32 to vector<8x64xf32>
    %239 = arith.select %237, %226, %238 : vector<8x64xi1>, vector<8x64xf32>
    %c3_112 = arith.constant 3 : index
    %c0_113 = arith.constant 0 : index
    %c0_114 = arith.constant 0 : index
    %240 = vector.load %arg6[%c3_112, %c0_113, %c0_114] : memref<9x8x8xf32, #tpu.memory_space<vmem>>, vector<1x8x8xf32>
    %241 = vector.shape_cast %240 : vector<1x8x8xf32> to vector<8x8xf32>
    %cst_115 = arith.constant dense<0.000000e+00> : vector<8x64xf32>
    %242 = tpu.matmul %241, %239, %cst_115 {dimension_numbers = #tpu.dot_dimension_numbers<[1], [0], [0], [1], [0, 0, 1, 1], [], []>} : vector<8x8xf32>, vector<8x64xf32>, vector<8x64xf32> -> vector<8x64xf32>
    %243 = arith.addf %223, %242 : vector<8x64xf32>
    %c4_116 = arith.constant 4 : index
    %c0_117 = arith.constant 0 : index
    %c0_118 = arith.constant 0 : index
    %244 = vector.load %arg6[%c4_116, %c0_117, %c0_118] : memref<9x8x8xf32, #tpu.memory_space<vmem>>, vector<1x8x8xf32>
    %245 = vector.shape_cast %244 : vector<1x8x8xf32> to vector<8x8xf32>
    %cst_119 = arith.constant dense<0.000000e+00> : vector<8x64xf32>
    %246 = tpu.matmul %245, %175, %cst_119 {dimension_numbers = #tpu.dot_dimension_numbers<[1], [0], [0], [1], [0, 0, 1, 1], [], []>} : vector<8x8xf32>, vector<8x64xf32>, vector<8x64xf32> -> vector<8x64xf32>
    %247 = arith.addf %243, %246 : vector<8x64xf32>
    %cst_120 = arith.constant 0.000000e+00 : f32
    %248 = vector.broadcast %cst_120 : f32 to vector<8x1xf32>
    %249 = vector.extract_strided_slice %175 {offsets = [0, 1], sizes = [8, 63], strides = [1, 1]} : vector<8x64xf32> to vector<8x63xf32>
    %250 = tpu.concatenate %249, %248 in 1 : vector<8x63xf32>, vector<8x1xf32> -> vector<8x64xf32>
    %c1_i32_121 = arith.constant 1 : i32
    %251 = vector.broadcast %c1_i32_121 : i32 to vector<1x64xi32>
    %252 = arith.addi %28, %251 : vector<1x64xi32>
    %c0_i32_122 = arith.constant 0 : i32
    %253 = vector.broadcast %c0_i32_122 : i32 to vector<1x64xi32>
    %254 = arith.cmpi sge, %252, %253 : vector<1x64xi32>
    %c1_i32_123 = arith.constant 1 : i32
    %255 = vector.broadcast %c1_i32_123 : i32 to vector<1x64xi32>
    %256 = arith.addi %28, %255 : vector<1x64xi32>
    %c8_i32_124 = arith.constant 8 : i32
    %257 = vector.broadcast %c8_i32_124 : i32 to vector<1x64xi32>
    %258 = arith.cmpi slt, %256, %257 : vector<1x64xi32>
    %259 = arith.andi %254, %258 : vector<1x64xi1>
    %cst_125 = arith.constant 0.000000e+00 : f32
    %260 = vector.shape_cast %259 : vector<1x64xi1> to vector<1x64xi1>
    %261 = vector.broadcast %260 : vector<1x64xi1> to vector<8x64xi1>
    %262 = vector.broadcast %cst_125 : f32 to vector<8x64xf32>
    %263 = arith.select %261, %250, %262 : vector<8x64xi1>, vector<8x64xf32>
    %c5_126 = arith.constant 5 : index
    %c0_127 = arith.constant 0 : index
    %c0_128 = arith.constant 0 : index
    %264 = vector.load %arg6[%c5_126, %c0_127, %c0_128] : memref<9x8x8xf32, #tpu.memory_space<vmem>>, vector<1x8x8xf32>
    %265 = vector.shape_cast %264 : vector<1x8x8xf32> to vector<8x8xf32>
    %cst_129 = arith.constant dense<0.000000e+00> : vector<8x64xf32>
    %266 = tpu.matmul %265, %263, %cst_129 {dimension_numbers = #tpu.dot_dimension_numbers<[1], [0], [0], [1], [0, 0, 1, 1], [], []>} : vector<8x8xf32>, vector<8x64xf32>, vector<8x64xf32> -> vector<8x64xf32>
    %267 = arith.addf %247, %266 : vector<8x64xf32>
    %cst_130 = arith.constant 0.000000e+00 : f32
    %268 = vector.broadcast %cst_130 : f32 to vector<8x7xf32>
    %269 = vector.extract_strided_slice %175 {offsets = [0, 7], sizes = [8, 57], strides = [1, 1]} : vector<8x64xf32> to vector<8x57xf32>
    %270 = tpu.concatenate %269, %268 in 1 : vector<8x57xf32>, vector<8x7xf32> -> vector<8x64xf32>
    %c-1_i32_131 = arith.constant -1 : i32
    %271 = vector.broadcast %c-1_i32_131 : i32 to vector<1x64xi32>
    %272 = arith.addi %28, %271 : vector<1x64xi32>
    %c0_i32_132 = arith.constant 0 : i32
    %273 = vector.broadcast %c0_i32_132 : i32 to vector<1x64xi32>
    %274 = arith.cmpi sge, %272, %273 : vector<1x64xi32>
    %c-1_i32_133 = arith.constant -1 : i32
    %275 = vector.broadcast %c-1_i32_133 : i32 to vector<1x64xi32>
    %276 = arith.addi %28, %275 : vector<1x64xi32>
    %c8_i32_134 = arith.constant 8 : i32
    %277 = vector.broadcast %c8_i32_134 : i32 to vector<1x64xi32>
    %278 = arith.cmpi slt, %276, %277 : vector<1x64xi32>
    %279 = arith.andi %274, %278 : vector<1x64xi1>
    %cst_135 = arith.constant 0.000000e+00 : f32
    %280 = vector.shape_cast %279 : vector<1x64xi1> to vector<1x64xi1>
    %281 = vector.broadcast %280 : vector<1x64xi1> to vector<8x64xi1>
    %282 = vector.broadcast %cst_135 : f32 to vector<8x64xf32>
    %283 = arith.select %281, %270, %282 : vector<8x64xi1>, vector<8x64xf32>
    %c6_136 = arith.constant 6 : index
    %c0_137 = arith.constant 0 : index
    %c0_138 = arith.constant 0 : index
    %284 = vector.load %arg6[%c6_136, %c0_137, %c0_138] : memref<9x8x8xf32, #tpu.memory_space<vmem>>, vector<1x8x8xf32>
    %285 = vector.shape_cast %284 : vector<1x8x8xf32> to vector<8x8xf32>
    %cst_139 = arith.constant dense<0.000000e+00> : vector<8x64xf32>
    %286 = tpu.matmul %285, %283, %cst_139 {dimension_numbers = #tpu.dot_dimension_numbers<[1], [0], [0], [1], [0, 0, 1, 1], [], []>} : vector<8x8xf32>, vector<8x64xf32>, vector<8x64xf32> -> vector<8x64xf32>
    %287 = arith.addf %267, %286 : vector<8x64xf32>
    %cst_140 = arith.constant 0.000000e+00 : f32
    %288 = vector.broadcast %cst_140 : f32 to vector<8x8xf32>
    %289 = vector.extract_strided_slice %175 {offsets = [0, 8], sizes = [8, 56], strides = [1, 1]} : vector<8x64xf32> to vector<8x56xf32>
    %290 = tpu.concatenate %289, %288 in 1 : vector<8x56xf32>, vector<8x8xf32> -> vector<8x64xf32>
    %c7_141 = arith.constant 7 : index
    %c0_142 = arith.constant 0 : index
    %c0_143 = arith.constant 0 : index
    %291 = vector.load %arg6[%c7_141, %c0_142, %c0_143] : memref<9x8x8xf32, #tpu.memory_space<vmem>>, vector<1x8x8xf32>
    %292 = vector.shape_cast %291 : vector<1x8x8xf32> to vector<8x8xf32>
    %cst_144 = arith.constant dense<0.000000e+00> : vector<8x64xf32>
    %293 = tpu.matmul %292, %290, %cst_144 {dimension_numbers = #tpu.dot_dimension_numbers<[1], [0], [0], [1], [0, 0, 1, 1], [], []>} : vector<8x8xf32>, vector<8x64xf32>, vector<8x64xf32> -> vector<8x64xf32>
    %294 = arith.addf %287, %293 : vector<8x64xf32>
    %cst_145 = arith.constant 0.000000e+00 : f32
    %295 = vector.broadcast %cst_145 : f32 to vector<8x9xf32>
    %296 = vector.extract_strided_slice %175 {offsets = [0, 9], sizes = [8, 55], strides = [1, 1]} : vector<8x64xf32> to vector<8x55xf32>
    %297 = tpu.concatenate %296, %295 in 1 : vector<8x55xf32>, vector<8x9xf32> -> vector<8x64xf32>
    %c1_i32_146 = arith.constant 1 : i32
    %298 = vector.broadcast %c1_i32_146 : i32 to vector<1x64xi32>
    %299 = arith.addi %28, %298 : vector<1x64xi32>
    %c0_i32_147 = arith.constant 0 : i32
    %300 = vector.broadcast %c0_i32_147 : i32 to vector<1x64xi32>
    %301 = arith.cmpi sge, %299, %300 : vector<1x64xi32>
    %c1_i32_148 = arith.constant 1 : i32
    %302 = vector.broadcast %c1_i32_148 : i32 to vector<1x64xi32>
    %303 = arith.addi %28, %302 : vector<1x64xi32>
    %c8_i32_149 = arith.constant 8 : i32
    %304 = vector.broadcast %c8_i32_149 : i32 to vector<1x64xi32>
    %305 = arith.cmpi slt, %303, %304 : vector<1x64xi32>
    %306 = arith.andi %301, %305 : vector<1x64xi1>
    %cst_150 = arith.constant 0.000000e+00 : f32
    %307 = vector.shape_cast %306 : vector<1x64xi1> to vector<1x64xi1>
    %308 = vector.broadcast %307 : vector<1x64xi1> to vector<8x64xi1>
    %309 = vector.broadcast %cst_150 : f32 to vector<8x64xf32>
    %310 = arith.select %308, %297, %309 : vector<8x64xi1>, vector<8x64xf32>
    %c8_151 = arith.constant 8 : index
    %c0_152 = arith.constant 0 : index
    %c0_153 = arith.constant 0 : index
    %311 = vector.load %arg6[%c8_151, %c0_152, %c0_153] : memref<9x8x8xf32, #tpu.memory_space<vmem>>, vector<1x8x8xf32>
    %312 = vector.shape_cast %311 : vector<1x8x8xf32> to vector<8x8xf32>
    %cst_154 = arith.constant dense<0.000000e+00> : vector<8x64xf32>
    %313 = tpu.matmul %312, %310, %cst_154 {dimension_numbers = #tpu.dot_dimension_numbers<[1], [0], [0], [1], [0, 0, 1, 1], [], []>} : vector<8x8xf32>, vector<8x64xf32>, vector<8x64xf32> -> vector<8x64xf32>
    %314 = arith.addf %294, %313 : vector<8x64xf32>
    %c0_155 = arith.constant 0 : index
    %c0_156 = arith.constant 0 : index
    %315 = vector.load %arg7[%c0_155, %c0_156] : memref<8x1xf32, #tpu.memory_space<vmem>>, vector<8x1xf32>
    %316 = vector.broadcast %315 : vector<8x1xf32> to vector<8x64xf32>
    %317 = arith.mulf %314, %316 : vector<8x64xf32>
    %c0_157 = arith.constant 0 : index
    %c0_158 = arith.constant 0 : index
    %318 = vector.load %arg8[%c0_157, %c0_158] : memref<8x1xf32, #tpu.memory_space<vmem>>, vector<8x1xf32>
    %319 = vector.broadcast %318 : vector<8x1xf32> to vector<8x64xf32>
    %320 = arith.addf %317, %319 : vector<8x64xf32>
    %cst_159 = arith.constant 0.000000e+00 : f32
    %321 = vector.broadcast %cst_159 : f32 to vector<8x64xf32>
    %322 = arith.maximumf %320, %321 : vector<8x64xf32>
    %c0_160 = arith.constant 0 : index
    %c0_161 = arith.constant 0 : index
    %c0_162 = arith.constant 0 : index
    %323 = vector.load %arg9[%c0_160, %c0_161, %c0_162] : memref<1x8x64xf32, #tpu.memory_space<vmem>>, vector<1x8x64xf32>
    %324 = vector.shape_cast %323 : vector<1x8x64xf32> to vector<8x64xf32>
    %325 = vector.shape_cast %322 : vector<8x64xf32> to vector<1x8x64xf32>
    tpu.vector_store %arg9[%c0_160, %c0_161, %c0_162], %325 {strides = array<i32>} : memref<1x8x64xf32, #tpu.memory_space<vmem>>, vector<1x8x64xf32>,
    return
  }
  func.func @transform_0(%arg0: i32) -> (i32, i32, i32) {
    %c0_i32 = arith.constant 0 : i32
    %c0_i32_0 = arith.constant 0 : i32
    %c0_i32_1 = arith.constant 0 : i32
    return %arg0, %c0_i32, %c0_i32_0 : i32, i32, i32
  }
  func.func @transform_1(%arg0: i32) -> (i32, i32) {
    %c0_i32 = arith.constant 0 : i32
    %c0_i32_0 = arith.constant 0 : i32
    %c0_i32_1 = arith.constant 0 : i32
    return %c0_i32, %c0_i32_0 : i32, i32
  }
  func.func @transform_2(%arg0: i32) -> (i32, i32, i32) {
    %c0_i32 = arith.constant 0 : i32
    %c0_i32_0 = arith.constant 0 : i32
    %c0_i32_1 = arith.constant 0 : i32
    %c0_i32_2 = arith.constant 0 : i32
    return %c0_i32, %c0_i32_0, %c0_i32_1 : i32, i32, i32
  }
  func.func @transform_3(%arg0: i32) -> (i32, i32) {
    %c0_i32 = arith.constant 0 : i32
    %c0_i32_0 = arith.constant 0 : i32
    %c0_i32_1 = arith.constant 0 : i32
    return %c0_i32, %c0_i32_0 : i32, i32
  }
  func.func @transform_4(%arg0: i32) -> (i32, i32) {
    %c0_i32 = arith.constant 0 : i32
    %c0_i32_0 = arith.constant 0 : i32
    %c0_i32_1 = arith.constant 0 : i32
    return %c0_i32, %c0_i32_0 : i32, i32
  }
  func.func @transform_5(%arg0: i32) -> (i32, i32, i32) {
    %c0_i32 = arith.constant 0 : i32
    %c0_i32_0 = arith.constant 0 : i32
    %c0_i32_1 = arith.constant 0 : i32
    %c0_i32_2 = arith.constant 0 : i32
    return %c0_i32, %c0_i32_0, %c0_i32_1 : i32, i32, i32
  }
  func.func @transform_6(%arg0: i32) -> (i32, i32) {
    %c0_i32 = arith.constant 0 : i32
    %c0_i32_0 = arith.constant 0 : i32
    %c0_i32_1 = arith.constant 0 : i32
    return %c0_i32, %c0_i32_0 : i32, i32
  }
  func.func @transform_7(%arg0: i32) -> (i32, i32) {
    %c0_i32 = arith.constant 0 : i32
    %c0_i32_0 = arith.constant 0 : i32
    %c0_i32_1 = arith.constant 0 : i32
    return %c0_i32, %c0_i32_0 : i32, i32
  }
  func.func @transform_8(%arg0: i32) -> (i32, i32, i32) {
    %c0_i32 = arith.constant 0 : i32
    %c0_i32_0 = arith.constant 0 : i32
    %c0_i32_1 = arith.constant 0 : i32
    return %arg0, %c0_i32, %c0_i32_0 : i32, i32, i32
  }
}

</mosaic_0001>

<bundles_post_ra>
// kernel: tpu_custom_call.1
= control target key start
LH: loop header
LB: loop body
LE: loop exit
PB: predicated region body
PF: predicated region fallthrough
CT: control target
= control target key end

     0   :  { %13 = vsyncpa [#allocation3], 0  ;;  %s2855_s0 = inlined_call_operand.vmem [shape: f32[2,4,256], index: 0, kind: input, shape index: {}]   ;;  %s2856_s1 = inlined_call_operand.vmem [shape: f32[256,64], index: 1, kind: input, shape index: {}]   ;;  %s2857_s2 = inlined_call_operand.vmem [shape: f32[9,8,4], index: 2, kind: input, shape index: {}]   ;;  %s2858_s3 = inlined_call_operand.vmem [shape: f32[8,1], index: 3, kind: input, shape index: {}]   ;;  %s2859_s4 = inlined_call_operand.vmem [shape: f32[8,1], index: 4, kind: input, shape index: {}]   ;;  %s2860_s5 = inlined_call_operand.vmem [shape: f32[9,8,8], index: 5, kind: input, shape index: {}]   ;;  %s2861_s6 = inlined_call_operand.vmem [shape: f32[8,1], index: 6, kind: input, shape index: {}]   ;;  %s2862_s7 = inlined_call_operand.vmem [shape: f32[8,1], index: 7, kind: input, shape index: {}]   ;;  %s2863_s8 = inlined_call_operand.hbm [shape: f32[2,8,64], index: 8, kind: output, shape index: {}]  }
   0x1   :  { %15 = vsyncpa [#allocation3 + $0x1], 0  ;;  %s2444_s27 = smov 0   ;;  %s2446_s28 = smov 0  }
   0x2   :  { %s2448_s29 = smov 0   ;;  %s2450_s30 = smov 0  }
   0x3 LB: > { %s2465_s9 = sadd.s32 4294967295, %s2384_s30   ;;  %s2045_s10 = sadd.s32 4294967294, %s2384_s30   ;;  %s2384_s30 = sphi %s2450_s30, %s2869_s30   ;;  %s2380_s29 = sphi %s2448_s29, %s2868_s29   ;;  %s2376_s28 = sphi %s2446_s28, %s2867_s28   ;;  %s2372_s27 = sphi %s2444_s27, %s2866_s27  }
   0x4   : > { %s2469_s11 = sadd.s32 1, %s2384_s30   ;;  %s201_s12 = sadd.s32 1, %s2380_s29 }
   0x5   : > { %s198_s13 = ssub.s32 %s2384_s30, %s2469_s11  ;;  %p211_p0 = scmp.ne.s32.totalorder %s2380_s29, %s2376_s28 }
   0x6   : > { %p199_p1 = scmp.eq.s32.totalorder %s198_s13, 0  ;;  %p212_p2 = scmp.eq.s32.totalorder %s2465_s9, 1 }
   0x7   : > { %p217_p3 = scmp.ne.s32.totalorder %s2376_s28, %s2372_s27  ;;  %p218_p4 = scmp.eq.s32.totalorder %s2045_s10, 1 }
   0x8   : > { %s2480_s14 = scalar_select %p199_p1, %s2380_s29, %s201_s12  }
   0x9   : > { %p2482_p5 = por %p212_p2, %p211_p0  ;;  %p2486_p6 = por %p218_p4, %p217_p3 }
   0xa   : > { %p2048_p7 = scmp.ge.s32.totalorder %s2384_s30, 1  ;;  %p265_p8 = scmp.lt.s32.totalorder %s2384_s30, 3 }
   0xc   : > { %p266_p9 = pnand %p2048_p7, %p265_p8 }
   0xd   : > { %p299_p10 = scmp.lt.s32.totalorder (!%p266_p9), %s2465_s9, 1  ;;  %s2386_s22 = smov (!%p266_p9), 127  }
   0xe   : > { %269 = sbr.rel (%p266_p9) target bundleno = 1169 (0x491), region = 52  ;;  %s2387_s10 = smov (!%p266_p9), 112  }
   0xf   : > { %s2390_s12 = smov (!%p266_p9), 9   ;;  %s2391_s13 = smov (!%p266_p9), 8  }
  0x10   : > { %s2394_s19 = smov (!%p266_p9), 121   ;;  %s2395_s20 = smov (!%p266_p9), 119  }
  0x11   : > { %s2105_s23 = sshll.u32 (!%p266_p9), %s2465_s9, 7 }
  0x13   : > { %s300_s17 = scalar_select %p299_p10, %s2465_s9, 1  ;;  %v364_v2 = vld [vmem:[%s2856_s1 + $0xf8] sm:$0xff]  ;;  %v363_v4 = vld [vmem:[%s2856_s1 + $0xf0] sm:$0xff]  ;;  %v362_v6 = vld [vmem:[%s2856_s1 + $0xe8] sm:$0xff]  ;;  %vm311_vm0 = vcmask 1039360   ;;  %vm325_vm1 = vcmask 916480   ;;  %v438_v55 = vlaneseq }
  0x14   : > { %v348_v3 = vld [vmem:[%s2856_s1 + $0x78] sm:$0xff]  ;;  %2109 = vmatprep.subr.mxu0 %v364_v2  ;;  %v347_v5 = vld [vmem:[%s2856_s1 + $0x70] sm:$0xff]  ;;  %v346_v7 = vld [vmem:[%s2856_s1 + $0x68] sm:$0xff]  ;;  %v2388_v48 = vmov 0.0   ;;  %vm2389_vm2 = vmmov 0   ;;  %v2397_v54 = vmov 0  }
  0x15   : > { %s2108_s18 = sshll.u32 %s300_s17, 3  ;;  %2110 = vmatpush3.msra.mxu0 %v348_v3  ;;  %v361_v8 = vld [vmem:[%s2856_s1 + $0xe0] sm:$0xff]  ;;  %v360_v10 = vld [vmem:[%s2856_s1 + $0xd8] sm:$0xff]  ;;  %v359_v12 = vld [vmem:[%s2856_s1 + $0xd0] sm:$0xff]  ;;  %2180 = vmatprep.subr.mxu1 %v2388_v48  ;;  %s2392_s17 = smov 1   ;;  %v439_v56 = vand.u32 127, %v438_v55 }
  0x16   : > { %s303_s21 = scalar_lea.vmem %s2855_s0, %s2108_s18  ;;  %2111 = vmatprep.subr.mxu0 %v363_v4  ;;  %v345_v9 = vld [vmem:[%s2856_s1 + $0x60] sm:$0xff]  ;;  %v344_v11 = vld [vmem:[%s2856_s1 + $0x58] sm:$0xff]  ;;  %v343_v13 = vld [vmem:[%s2856_s1 + $0x50] sm:$0xff]  ;;  %2182 = vmatprep.mubr.msk.f32.mxu1 %vm2389_vm2, %v2388_v48  ;;  %s2393_s18 = smov 7   ;;  %vm456_vm3 = vcmask 72704   ;;  %vm469_vm4 = vcmask 64512  }
  0x17   : > { %v2497_v0 = vld [vmem:[%s303_s21] sm:$0xff]  ;;  %2112 = vmatpush3.msra.mxu0 %v347_v5  ;;  %v358_v14 = vld [vmem:[%s2856_s1 + $0xc8] sm:$0xff]  ;;  %v356_v18 = vld [vmem:[%s2856_s1 + $0xb8] sm:$0xff]  ;;  %s2396_s21 = smov 120   ;;  %2321 = vset.pattern.permute.xlu0 %v2397_v54  ;;  %v444_v57 = vand.u32 7, %v439_v56  ;;  %vm477_vm6 = vcmask 1043456  }
  0x18   : > { %307 = vrot.lane.b32.xlu0 %v2497_v0, %s2386_s22  ;;  %v306_v1 = vcombine.high %v2497_v0, %v2497_v0  ;;  %2113 = vmatprep.subr.mxu0 %v362_v6  ;;  %v342_v15 = vld [vmem:[%s2856_s1 + $0x48] sm:$0xff]  ;;  %v357_v16 = vld [vmem:[%s2856_s1 + $0xc0] sm:$0xff]  ;;  %v340_v19 = vld [vmem:[%s2856_s1 + $0x38] sm:$0xff]  ;;  %vm473_vm7 = vcmask 31744   ;;  %vm630_vm8 = vcmask 56320   ;;  %vm721_vm10 = vcmask 7168  }
  0x19   : > { %2114 = vmatpush3.msra.mxu0 %v346_v7  ;;  %v341_v17 = vld [vmem:[%s2856_s1 + $0x40] sm:$0xff]  ;;  %v355_v20 = vld [vmem:[%s2856_s1 + $0xb0] sm:$0xff]  ;;  %v354_v22 = vld [vmem:[%s2856_s1 + $0xa8] sm:$0xff]  ;;  %2322 = vset.pattern.permute.xlu1 %v2397_v54  ;;  %v2631_v58 = vadd.s32 4294967295, %v444_v57  ;;  %v2634_v59 = vadd.s32 1, %v444_v57  ;;  %vm884_vm11 = vcmask 515072  }
  0x1a   : > { %2115 = vmatprep.subr.mxu0 %v361_v8  ;;  %v339_v21 = vld [vmem:[%s2856_s1 + $0x30] sm:$0xff]  ;;  %v338_v23 = vld [vmem:[%s2856_s1 + $0x28] sm:$0xff]  ;;  %v353_v24 = vld [vmem:[%s2856_s1 + $0xa0] sm:$0xff]  ;;  %vm969_vm12 = vcmask 465920   ;;  %vm1054_vm13 = vcmask 457728   ;;  %vm1138_vm14 = vcmask 449536  }
  0x1b   : > { %2116 = vmatpush3.msra.mxu0 %v345_v9  ;;  %v337_v25 = vld [vmem:[%s2856_s1 + $0x20] sm:$0xff]  ;;  %v352_v27 = vld [vmem:[%s2856_s1 + $0x98] sm:$0xff]  ;;  %v351_v29 = vld [vmem:[%s2856_s1 + $0x90] sm:$0xff]  ;;  %vm459_vm5 = vcmp.ge.s32.totalorder %v2631_v58, 0  ;;  %vm634_vm9 = vcmp.lt.s32.totalorder %v2634_v59, 8 }
  0x1c   : > { %309 = vrot.lane.b32.xlu0 %v306_v1, %s2386_s22  ;;  %2117 = vmatprep.subr.mxu0 %v360_v10  ;;  %v336_v28 = vld [vmem:[%s2856_s1 + $0x18] sm:$0xff]  ;;  %v335_v30 = vld [vmem:[%s2856_s1 + $0x10] sm:$0xff]  ;;  %v350_v31 = vld [vmem:[%s2856_s1 + $0x88] sm:$0xff] }
  0x1d   : > { %2118 = vmatpush3.msra.mxu0 %v344_v11  ;;  %v334_v32 = vld [vmem:[%s2856_s1 + $0x8] sm:$0xff]  ;;  %v349_v34 = vld [vmem:[%s2856_s1 + $0x80] sm:$0xff]  ;;  %v2057_v8 = vld [vmem:[%s2857_s2 + $0x10] sm:$0xff] }
  0x1e   : > { %2119 = vmatprep.subr.mxu0 %v359_v12  ;;  %v333_v37 = vld [vmem:[%s2856_s1] sm:$0xff]  ;;  %v2052_v62 = vld [vmem:[%s2857_s2 + $0x8] sm:$0xff]  ;;  %v2060_v10 = vld [vmem:[%s2857_s2 + $0x18] sm:$0xff] }
  0x1f   : > { %2120 = vmatpush3.msra.mxu0 %v343_v13  ;;  %v1220_v52 = vld [vmem:[%s2858_s3] sm:$0xff]  ;;  %vm2079_vm15 = vmneg %vm469_vm4  ;;  %v2098_v58 = vld [vmem:[%s2860_s5 + $0x38] sm:$0xff] }
  0x20   : > { %2121 = vmatprep.subr.mxu0 %v358_v14  ;;  %v1227_v53 = vld [vmem:[%s2859_s4] sm:$0xff] }
  0x21   : > { %2122 = vmatpush3.msra.mxu0 %v342_v15  ;;  %v465_v3 = vld [vmem:[%s2857_s2] sm:$0xff] }
  0x22   : > { %2123 = vmatprep.subr.mxu0 %v357_v16  ;;  %v2063_v13 = vld [vmem:[%s2857_s2 + $0x20] sm:$0xff] }
  0x23   : > { %2124 = vmatpush3.msra.mxu0 %v341_v17  ;;  %v2066_v17 = vld [vmem:[%s2857_s2 + $0x28] sm:$0xff] }
  0x24   : > { %2125 = vmatprep.subr.mxu0 %v356_v18 }
  0x25   : > { %2126 = vmatpush3.msra.mxu0 %v340_v19 }
  0x26   : > { %2127 = vmatprep.subr.mxu0 %v355_v20  ;;  %v2069_v20 = vld [vmem:[%s2857_s2 + $0x30] sm:$0xff] }
  0x27   : > { %2128 = vmatpush3.msra.mxu0 %v339_v21 }
  0x28   : > { %2129 = vmatprep.subr.mxu0 %v354_v22 }
  0x29   : > { %2130 = vmatpush3.msra.mxu0 %v338_v23 }
  0x2a   : > { %2131 = vmatprep.subr.mxu0 %v353_v24  ;;  %v2072_v24 = vld [vmem:[%s2857_s2 + $0x38] sm:$0xff] }
  0x2b   : > { %2132 = vmatpush3.msra.mxu0 %v337_v25 }
  0x2c   : > { %2133 = vmatprep.subr.mxu0 %v352_v27 }
  0x2d   : > { %2134 = vmatpush3.msra.mxu0 %v336_v28 }
  0x2e   : > { %2135 = vmatprep.subr.mxu0 %v351_v29 }
  0x2f   : > { %2136 = vmatpush3.msra.mxu0 %v335_v30 }
  0x30   : > { %2137 = vmatprep.subr.mxu0 %v350_v31 }
  0x31   : > { %2138 = vmatpush3.msra.mxu0 %v334_v32 }
  0x32   : > { %2139 = vmatprep.subr.mxu0 %v349_v34 }
  0x33   : > { %2140 = vmatpush3.msra.mxu0 %v333_v37 }
  0x34   : > { %2225 = vmatprep.subr.mxu0 %v2388_v48 }
  0x8a   : > { %v308_v26 = vpop.permute.xlu0 %307 }
  0x8e   : > { %v310_v33 = vpop.permute.xlu0 %309 }
  0x8f   : > { %v312_v35 = vsel %vm311_vm0, %v308_v26, %v310_v33  ;;  %v314_v36 = vsel %vm311_vm0, %v310_v33, 0.0  ;;  %v2075_v26 = vld [vmem:[%s2857_s2 + $0x40] sm:$0xff]  ;;  %vm1970_vm0 = vcmask 523264  }
  0x90   : > { %v316_v38 = vcombine.low %v312_v35, %v314_v36 }
  0x92   : > { %v318_v39 = vmax.f32 %v2497_v0, %v316_v38 }
  0x94   : > { %321 = vrot.lane.b32.xlu1 %v318_v39, %s2387_s10  ;;  %v320_v40 = vcombine.high %v318_v39, %v318_v39 }
  0x98   : > { %323 = vrot.lane.b32.xlu1 %v320_v40, %s2387_s10 }
 0x106   : > { %v322_v41 = vpop.permute.xlu1 %321 }
 0x10a   : > { %v324_v42 = vpop.permute.xlu1 %323 }
 0x10b   : > { %v326_v43 = vsel %vm325_vm1, %v322_v41, %v324_v42  ;;  %v328_v44 = vsel %vm325_vm1, %v324_v42, 0.0 }
 0x10c   : > { %v330_v45 = vcombine.low %v326_v43, %v328_v44 }
 0x10e   : > { %v332_v46 = vmax.f32 %v318_v39, %v330_v45 }
 0x110   : > { %v366_v47 = vcombine.high %v332_v46, %v332_v46 }
 0x112   : > { %432 = vmatprep.mubr.f32.mxu0 %v366_v47 }
 0x113   : > { %433 = vmatmul.mubr.f32.vlgmr.msra.gmra.mxu0 %v332_v46 }
 0x114   : > { %2227 = vmatprep.mubr.msk.f32.mxu0 %vm2389_vm2, %v2388_v48 }
 0x1d3   : > { %v2141_v49 = vpop.f32.mrf.mxu0 }
 0x1d5   : > { %v2142_v50 = vpop.f32.mrf.mxu0 }
 0x1d6   : > { %v2607_v51 = vadd.f32 %v2142_v50, %v2141_v49 }
 0x1d8   : > { %453 = vrot.lane.b32.xlu1 %v2607_v51, %s2390_s12  ;;  %466 = vrot.lane.b32.xlu0 %v2607_v51, %s2391_s13 }
 0x1dc   : > { %718 = vrot.lane.b32.xlu1 %v2607_v51, %s2392_s17  ;;  %627 = vrot.lane.b32.xlu0 %v2607_v51, %s2393_s18 }
 0x1e0   : > { %966 = vrot.lane.b32.xlu1 %v2607_v51, %s2394_s19  ;;  %881 = vrot.lane.b32.xlu0 %v2607_v51, %s2386_s22 }
 0x1e4   : > { %1135 = vrot.lane.b32.xlu1 %v2607_v51, %s2395_s20  ;;  %1051 = vrot.lane.b32.xlu0 %v2607_v51, %s2396_s21 }
 0x1e8   : > { %1223 = vperm.xlu0 %2321, %v1220_v52   ;;  %1230 = vperm.xlu1 %2322, %v1227_v53  }
 0x24a   : > { %v454_v60 = vpop.permute.xlu1 %453  ;;  %v467_v61 = vpop.permute.xlu0 %466 }
 0x24b   : > { %v457_v63 = vsel %vm456_vm3, 0.0, %v454_v60  ;;  %v470_v0 = vsel %vm469_vm4, 0.0, %v467_v61  ;;  %v1962_v61 = vld [vmem:[%s2862_s7] sm:$0xff] }
 0x24c   : > { %v464_v1 = vsel %vm459_vm5, %v457_v63, 0.0  ;;  %2181 = vmatpush3.msk.msra.mxu1 %vm477_vm6, %v470_v0  ;;  %v2078_v63 = vld [vmem:[%s2860_s5 + $0x8] sm:$0xff] }
 0x24d   : > { %2183 = vmatmul.mubr.msk.f32.vlgmr.msra.gmra.mxu1 %vm473_vm7, %v2052_v62  ;;  %2185 = vmatprep.subr.mxu1 %v2388_v48  ;;  %v1955_v62 = vld [vmem:[%s2861_s6] sm:$0xff] }
 0x24e   : > { %2186 = vmatpush3.msk.msra.mxu1 %vm477_vm6, %v464_v1  ;;  %v628_v2 = vpop.permute.xlu0 %627  ;;  %2187 = vmatprep.mubr.msk.f32.mxu1 %vm2389_vm2, %v2388_v48  ;;  %v719_v4 = vpop.permute.xlu1 %718 }
 0x24f   : > { %v631_v5 = vsel %vm630_vm8, 0.0, %v628_v2  ;;  %2190 = vmatprep.subr.mxu1 %v2388_v48  ;;  %v722_v7 = vsel %vm721_vm10, 0.0, %v719_v4  ;;  %v1241_v2 = vld [vmem:[%s2860_s5] sm:$0xff] }
 0x250   : > { %v638_v6 = vsel %vm634_vm9, %v631_v5, 0.0  ;;  %v723_v9 = vsel %vm459_vm5, %v722_v7, 0.0 }
 0x251   : > { %2188 = vmatmul.mubr.msk.f32.vlgmr.msra.gmra.mxu1 %vm473_vm7, %v465_v3 }
 0x252   : > { %2191 = vmatpush3.msk.msra.mxu1 %vm477_vm6, %v638_v6  ;;  %2192 = vmatprep.mubr.msk.f32.mxu1 %vm2389_vm2, %v2388_v48  ;;  %v882_v11 = vpop.permute.xlu0 %881  ;;  %v967_v14 = vpop.permute.xlu1 %966  ;;  %v2084_v6 = vld [vmem:[%s2860_s5 + $0x10] sm:$0xff] }
 0x253   : > { %2195 = vmatprep.subr.mxu1 %v2388_v48  ;;  %v885_v12 = vsel %vm884_vm11, %v882_v11, 0.0  ;;  %v970_v16 = vsel %vm969_vm12, %v967_v14, 0.0 }
 0x254   : > { %v886_v15 = vsel %vm634_vm9, %v885_v12, 0.0  ;;  %v971_v18 = vsel %vm459_vm5, %v970_v16, 0.0  ;;  %v2090_v12 = vld [vmem:[%s2860_s5 + $0x20] sm:$0xff] }
 0x255   : > { %2193 = vmatmul.mubr.msk.f32.vlgmr.msra.gmra.mxu1 %vm473_vm7, %v2057_v8 }
 0x256   : > { %2196 = vmatpush3.msk.msra.mxu1 %vm477_vm6, %v723_v9  ;;  %2197 = vmatprep.mubr.msk.f32.mxu1 %vm2389_vm2, %v2388_v48  ;;  %v1052_v19 = vpop.permute.xlu0 %1051  ;;  %v1136_v21 = vpop.permute.xlu1 %1135  ;;  %v2087_v9 = vld [vmem:[%s2860_s5 + $0x18] sm:$0xff] }
 0x257   : > { %2200 = vmatprep.subr.mxu1 %v2388_v48  ;;  %v1055_v22 = vsel %vm1054_vm13, %v1052_v19, 0.0  ;;  %v1139_v23 = vsel %vm1138_vm14, %v1136_v21, 0.0 }
 0x258   : > { %v1140_v25 = vsel %vm634_vm9, %v1139_v23, 0.0 }
 0x259   : > { %2198 = vmatmul.mubr.msk.f32.vlgmr.msra.gmra.mxu1 %vm473_vm7, %v2060_v10 }
 0x25a   : > { %2201 = vmatpush3.msk.msra.mxu1 %vm477_vm6, %v2607_v51  ;;  %2202 = vmatprep.mubr.msk.f32.mxu1 %vm2389_vm2, %v2388_v48 }
 0x25b   : > { %2205 = vmatprep.subr.mxu1 %v2388_v48 }
 0x25d   : > { %2203 = vmatmul.mubr.msk.f32.vlgmr.msra.gmra.mxu1 %vm473_vm7, %v2063_v13 }
 0x25e   : > { %2206 = vmatpush3.msk.msra.mxu1 %vm477_vm6, %v886_v15  ;;  %2207 = vmatprep.mubr.msk.f32.mxu1 %vm2389_vm2, %v2388_v48  ;;  %v2092_v15 = vld [vmem:[%s2860_s5 + $0x28] sm:$0xff] }
 0x25f   : > { %2210 = vmatprep.subr.mxu1 %v2388_v48 }
 0x261   : > { %2208 = vmatmul.mubr.msk.f32.vlgmr.msra.gmra.mxu1 %vm473_vm7, %v2066_v17 }
 0x262   : > { %2211 = vmatpush3.msk.msra.mxu1 %vm477_vm6, %v971_v18  ;;  %2212 = vmatprep.mubr.msk.f32.mxu1 %vm2389_vm2, %v2388_v48  ;;  %v2095_v18 = vld [vmem:[%s2860_s5 + $0x30] sm:$0xff] }
 0x263   : > { %2215 = vmatprep.subr.mxu1 %v2388_v48  ;;  %v1224_v52 = vpop.permute.xlu0 %1223  ;;  %v1231_v55 = vpop.permute.xlu1 %1230 }
 0x265   : > { %2213 = vmatmul.mubr.msk.f32.vlgmr.msra.gmra.mxu1 %vm473_vm7, %v2069_v20  ;;  %v2101_v20 = vld [vmem:[%s2860_s5 + $0x40] sm:$0xff] }
 0x266   : > { %2216 = vmatpush3.msk.msra.mxu1 %vm477_vm6, %v1055_v22  ;;  %2217 = vmatprep.mubr.msk.f32.mxu1 %vm2389_vm2, %v2388_v48 }
 0x267   : > { %2220 = vmatprep.subr.mxu1 %v2388_v48 }
 0x269   : > { %2218 = vmatmul.mubr.msk.f32.vlgmr.msra.gmra.mxu1 %vm473_vm7, %v2072_v24 }
 0x26a   : > { %2221 = vmatpush3.msk.msra.mxu1 %vm477_vm6, %v1140_v25  ;;  %2222 = vmatprep.mubr.msk.f32.mxu1 %vm2389_vm2, %v2388_v48 }
 0x26b   : > { %2230 = vmatprep.subr.mxu1 %v2388_v48 }
 0x26d   : > { %2223 = vmatmul.mubr.msk.f32.vlgmr.msra.gmra.mxu1 %vm473_vm7, %v2075_v26 }
 0x26e   : > { %2232 = vmatprep.mubr.msk.f32.mxu1 %vm2389_vm2, %v2388_v48 }
 0x30d   : > { %v547_v27 = vpop.f32.mrf.mxu1 }
 0x30f   : > { %v2184_v28 = vpop.f32.mrf.mxu1 }
 0x311   : > { %v623_v29 = vpop.f32.mrf.mxu1 }
 0x312   : > { %v624_v37 = vadd.f32 %v623_v29, %v547_v27 }
 0x313   : > { %v2189_v30 = vpop.f32.mrf.mxu1 }
 0x315   : > { %v713_v31 = vpop.f32.mrf.mxu1 }
 0x316   : > { %v717_v39 = vadd.f32 %v713_v31, %v624_v37 }
 0x317   : > { %v2194_v32 = vpop.f32.mrf.mxu1 }
 0x319   : > { %v798_v33 = vpop.f32.mrf.mxu1 }
 0x31a   : > { %v802_v41 = vadd.f32 %v798_v33, %v717_v39 }
 0x31b   : > { %v2199_v34 = vpop.f32.mrf.mxu1 }
 0x31d   : > { %v876_v35 = vpop.f32.mrf.mxu1 }
 0x31e   : > { %v880_v43 = vadd.f32 %v876_v35, %v802_v41 }
 0x31f   : > { %v2204_v36 = vpop.f32.mrf.mxu1 }
 0x321   : > { %v961_v38 = vpop.f32.mrf.mxu1 }
 0x322   : > { %v965_v45 = vadd.f32 %v961_v38, %v880_v43 }
 0x323   : > { %v2209_v40 = vpop.f32.mrf.mxu1 }
 0x325   : > { %v1046_v42 = vpop.f32.mrf.mxu1 }
 0x326   : > { %v1050_v47 = vadd.f32 %v1046_v42, %v965_v45 }
 0x327   : > { %v2214_v44 = vpop.f32.mrf.mxu1 }
 0x329   : > { %v1130_v46 = vpop.f32.mrf.mxu1 }
 0x32a   : > { %v1134_v50 = vadd.f32 %v1130_v46, %v1050_v47 }
 0x32b   : > { %v2219_v49 = vpop.f32.mrf.mxu1 }
 0x32d   : > { %v1215_v51 = vpop.f32.mrf.mxu1 }
 0x32e   : > { %v1219_v53 = vadd.f32 %v1215_v51, %v1134_v50 }
 0x32f   : > { %v2224_v54 = vpop.f32.mrf.mxu1 }
 0x330   : > { %v1226_v56 = vmul.f32 %v1224_v52, %v1219_v53 }
 0x332   : > { %v1233_v57 = vadd.f32 %v1231_v55, %v1226_v56 }
 0x334   : > { %v1234_v60 = vmax.f32 %v1233_v57, 0.0 }
 0x336   : > { %1236 = vrot.lane.b32.xlu0 %v1234_v60, %s2390_s12  ;;  %1242 = vrot.lane.b32.xlu1 %v1234_v60, %s2391_s13  ;;  %s1984_s12 = scalar_lea.hbm %s2863_s8, %s2105_s23 }
 0x33a   : > { %1475 = vrot.lane.b32.xlu0 %v1234_v60, %s2392_s17  ;;  %1394 = vrot.lane.b32.xlu1 %v1234_v60, %s2393_s18 }
 0x33e   : > { %1713 = vrot.lane.b32.xlu0 %v1234_v60, %s2394_s19  ;;  %1632 = vrot.lane.b32.xlu1 %v1234_v60, %s2386_s22  ;;  %s2398_s22 = smov [#allocation2]  }
 0x33f   : > { %s2328_s18 = sshll.u32 %s2398_s22, 4  ;;  %s2329_s18 = int_to_ptr.vmem [resolvable:$false] %s2328_s18 }
 0x340   : > { %s2330_s9 = scalar_lea.vmem %s2329_s18, 256 }
 0x342   : > { %1874 = vrot.lane.b32.xlu0 %v1234_v60, %s2395_s20  ;;  %1794 = vrot.lane.b32.xlu1 %v1234_v60, %s2396_s21  ;;  %s296_s20 = sand.u32 1, %s2376_s28  }
 0x343   : > { %s2049_s21 = sshll.u32 %s296_s20, 3  ;;  %s1973_s13 = scalar_lea.sflag [#allocation3], %s296_s20 }
 0x344   : > { %s298_s24 = scalar_lea.vmem [#allocation2], %s2049_s21 }
 0x345   : > { %s1986_s25 = sshll.u32 %s298_s24, 4  ;;  %s1987_s25 = int_to_ptr.vmem [resolvable:$true] %s1986_s25 }
 0x346   : > { %1965 = vperm.xlu0 %2321, %v1962_v61   ;;  %1958 = vperm.xlu1 %2322, %v1955_v62   ;;  %s2324_s17 = scalar_lea.vmem %s1987_s25, 128  ;;  %p2331_p0 = scmp.lt.s32.totalorder %s1987_s25, %s2329_s18 }
 0x347   : > { %p2325_p11 = scmp.ne.s32.totalorder %s1987_s25, %s2324_s17  ;;  %p2332_p1 = scmp.lt.s32.totalorder %s2330_s9, %s2324_s17 }
 0x349   : > { %p2326_p12 = pnand %p2325_p11, %p2482_p5  ;;  %p2333_p2 = por %p2332_p1, %p2331_p0 }
 0x34b   : > { %p2327_p13 = pneg %p2326_p12 }
 0x34d   : > { %p2334_p3 = pnand %p2333_p2, %p2327_p13 }
 0x3a8   : > { %v1237_v0 = vpop.permute.xlu0 %1236  ;;  %v1243_v1 = vpop.permute.xlu1 %1242 }
 0x3a9   : > { %v1239_v3 = vsel %vm456_vm3, 0.0, %v1237_v0  ;;  %2226 = vmatpush3.msk.msra.mxu0 %vm2079_vm15, %v1243_v1 }
 0x3aa   : > { %2231 = vmatpush3.msk.msra.mxu1 %vm459_vm5, %v1239_v3  ;;  %2228 = vmatmul.mubr.msk.f32.vlgmr.msra.gmra.mxu0 %vm469_vm4, %v2078_v63 }
 0x3ab   : > { %2233 = vmatmul.mubr.msk.f32.vlgmr.msra.gmra.mxu1 %vm469_vm4, %v1241_v2  ;;  %2235 = vmatprep.subr.mxu0 %v2388_v48 }
 0x3ac   : > { %v1476_v4 = vpop.permute.xlu0 %1475  ;;  %v1395_v5 = vpop.permute.xlu1 %1394  ;;  %2240 = vmatprep.subr.mxu1 %v2388_v48  ;;  %2237 = vmatprep.mubr.msk.f32.mxu0 %vm2389_vm2, %v2388_v48 }
 0x3ad   : > { %v1478_v7 = vsel %vm721_vm10, 0.0, %v1476_v4  ;;  %v1397_v8 = vsel %vm630_vm8, 0.0, %v1395_v5  ;;  %2242 = vmatprep.mubr.msk.f32.mxu1 %vm2389_vm2, %v2388_v48 }
 0x3ae   : > { %2236 = vmatpush3.msk.msra.mxu0 %vm634_vm9, %v1397_v8  ;;  %2241 = vmatpush3.msk.msra.mxu1 %vm459_vm5, %v1478_v7 }
 0x3af   : > { %2238 = vmatmul.mubr.msk.f32.vlgmr.msra.gmra.mxu0 %vm469_vm4, %v2084_v6  ;;  %2245 = vmatprep.subr.mxu0 %v2388_v48 }
 0x3b0   : > { %v1714_v10 = vpop.permute.xlu0 %1713  ;;  %2246 = vmatpush3.msra.mxu0 %v1234_v60  ;;  %v1633_v11 = vpop.permute.xlu1 %1632  ;;  %2243 = vmatmul.mubr.msk.f32.vlgmr.msra.gmra.mxu1 %vm469_vm4, %v2087_v9 }
 0x3b1   : > { %v1716_v13 = vsel %vm969_vm12, %v1714_v10, 0.0  ;;  %v1635_v14 = vsel %vm884_vm11, %v1633_v11, 0.0  ;;  %2250 = vmatprep.subr.mxu1 %v2388_v48  ;;  %2247 = vmatprep.mubr.msk.f32.mxu0 %vm2389_vm2, %v2388_v48 }
 0x3b2   : > { %2251 = vmatpush3.msk.msra.mxu1 %vm634_vm9, %v1635_v14  ;;  %2255 = vmatprep.subr.mxu0 %v2388_v48 }
 0x3b3   : > { %2248 = vmatmul.mubr.msk.f32.vlgmr.msra.gmra.mxu0 %vm469_vm4, %v2090_v12  ;;  %2252 = vmatprep.mubr.msk.f32.mxu1 %vm2389_vm2, %v2388_v48 }
 0x3b4   : > { %2256 = vmatpush3.msk.msra.mxu0 %vm459_vm5, %v1716_v13  ;;  %v1875_v16 = vpop.permute.xlu0 %1874  ;;  %2260 = vmatprep.subr.mxu1 %v2388_v48  ;;  %v1795_v17 = vpop.permute.xlu1 %1794 }
 0x3b5   : > { %v1877_v19 = vsel %vm1138_vm14, %v1875_v16, 0.0  ;;  %2253 = vmatmul.mubr.msk.f32.vlgmr.msra.gmra.mxu1 %vm469_vm4, %v2092_v15  ;;  %2257 = vmatprep.mubr.msk.f32.mxu0 %vm2389_vm2, %v2388_v48 }
 0x3b6   : > { %2261 = vmatpush3.msk.msra.mxu1 %vm1054_vm13, %v1795_v17  ;;  %2265 = vmatprep.subr.mxu0 %v2388_v48 }
 0x3b7   : > { %2258 = vmatmul.mubr.msk.f32.vlgmr.msra.gmra.mxu0 %vm469_vm4, %v2095_v18  ;;  %2262 = vmatprep.mubr.msk.f32.mxu1 %vm2389_vm2, %v2388_v48 }
 0x3b8   : > { %2266 = vmatpush3.msk.msra.mxu0 %vm634_vm9, %v1877_v19  ;;  %2267 = vmatprep.mubr.msk.f32.mxu0 %vm2389_vm2, %v2388_v48 }
 0x3b9   : > { %2263 = vmatmul.mubr.msk.f32.vlgmr.msra.gmra.mxu1 %vm469_vm4, %v2098_v58 }
 0x3bb   : > { %2268 = vmatmul.mubr.msk.f32.vlgmr.msra.gmra.mxu0 %vm469_vm4, %v2101_v20 }
 0x3c1   : > { %v1959_v44 = vpop.permute.xlu1 %1958  ;;  %v1966_v47 = vpop.permute.xlu0 %1965 }
 0x46a   : > { %v1317_v21 = vpop.f32.mrf.mxu0 }
 0x46b   : > { %v1390_v22 = vpop.f32.mrf.mxu1 }
 0x46c   : > { %v2229_v23 = vpop.f32.mrf.mxu0  ;;  %v1391_v25 = vadd.f32 %v1390_v22, %v1317_v21 }
 0x46d   : > { %v2234_v24 = vpop.f32.mrf.mxu1 }
 0x46f   : > { %v1470_v26 = vpop.f32.mrf.mxu0 }
 0x470   : > { %v1474_v59 = vadd.f32 %v1470_v26, %v1391_v25  ;;  %v1551_v27 = vpop.f32.mrf.mxu1 }
 0x471   : > { %v2239_v28 = vpop.f32.mrf.mxu0 }
 0x472   : > { %v1555_v29 = vadd.f32 %v1551_v27, %v1474_v59  ;;  %v2244_v48 = vpop.f32.mrf.mxu1 }
 0x473   : > { %v1627_v30 = vpop.f32.mrf.mxu0 }
 0x474   : > { %v1631_v31 = vadd.f32 %v1627_v30, %v1555_v29 }
 0x475   : > { %v2249_v32 = vpop.f32.mrf.mxu0  ;;  %v1708_v33 = vpop.f32.mrf.mxu1 }
 0x476   : > { %v1712_v34 = vadd.f32 %v1708_v33, %v1631_v31 }
 0x477   : > { %v2254_v35 = vpop.f32.mrf.mxu1  ;;  %v1789_v36 = vpop.f32.mrf.mxu0 }
 0x478   : > { %v1793_v37 = vadd.f32 %v1789_v36, %v1712_v34 }
 0x479   : > { %v2259_v38 = vpop.f32.mrf.mxu0  ;;  %v1869_v39 = vpop.f32.mrf.mxu1 }
 0x47a   : > { %v1873_v40 = vadd.f32 %v1869_v39, %v1793_v37 }
 0x47b   : > { %v1950_v41 = vpop.f32.mrf.mxu0  ;;  %v2264_v42 = vpop.f32.mrf.mxu1 }
 0x47c   : > { %v1954_v43 = vadd.f32 %v1950_v41, %v1873_v40 }
 0x47d   : > { %v2269_v45 = vpop.f32.mrf.mxu0 }
 0x47e   : > { %v1961_v46 = vmul.f32 %v1959_v44, %v1954_v43 }
 0x480   : > { %v1968_v49 = vadd.f32 %v1966_v47, %v1961_v46 }
 0x482   : > { %v1969_v50 = vmax.f32 %v1968_v49, 0.0 }
 0x484   : > { %1971 = vst.msk [vmem:[%s298_s24] sm:$0xff] %vm1970_vm0, %v1969_v50 }
 0x485   : > { %2337 = shalt.err (!%p2334_p3)
}
 0x486   : > { %s2338_s19 = scalar_lea.hbm %s1984_s12, 128  ;;  %s2342_s23 = scalar_lea.hbm %s2863_s8, 256 }
 0x487   : > { %p2339_p4 = scmp.ne.s32.totalorder %s1984_s12, %s2338_s19  ;;  %p2343_p9 = scmp.lt.s32.totalorder %s1984_s12, %s2863_s8 }
 0x488   : > { %p2344_p10 = scmp.lt.s32.totalorder %s2342_s23, %s2338_s19 }
 0x489   : > { %p2340_p7 = pnand %p2339_p4, %p2482_p5 }
 0x48a   : > { %p2345_p11 = por %p2344_p10, %p2343_p9 }
 0x48b   : > { %p2341_p8 = pneg %p2340_p7 }
 0x48d   : > { %p2346_p12 = pnand %p2345_p11, %p2341_p8 }
 0x48f   : > { %2349 = shalt.err (!%p2346_p12)
}
 0x490   : > { %2270 = dma.vmem_to_hbm [thread:$0]  (%p2482_p5), %s1987_s25, 128, %s1984_s12, %s1973_s13  }
 0x491 PF: > { %p2276_p13 = scmp.ge.s32.totalorder %s2384_s30, 2  ;;  %s1998_s10 = sand.u32 1, %s2372_s27  }
 0x492   : > { %s1999_s17 = scalar_lea.sflag [#allocation3], %s1998_s10 }
 0x493   : > { %p2273_p0 = pnand %p2276_p13, %p2486_p6 }
 0x495   : > { %p2274_p1 = pneg %p2273_p0 }
 0x497   : > { %2367 = dma.done.wait (%p2274_p1), %s1999_s17, 128  }
 0x498   : > { %2369 = vsyncadd (%p2274_p1), %s1999_s17, 4294967168  ;;  %p18_p2 = scmp.ge.s32.totalorder %s2469_s11, 4   ;;  %s2866_s27 = smov %s2376_s28 }
 0x499   : > { %s2867_s28 = smov %s2380_s29  ;;  %s2868_s29 = smov %s2480_s14 }
 0x49a   : > { %s2869_s30 = smov %s2469_s11  ;;  %20 = sbr.rel (!%p18_p2) target bundleno = 3 (0x3), region = 103 }
 0x49f   :  { %2004 = vsyncpa [#allocation3], 1 }
 0x4a0   :  { %2006 = vsyncpa [#allocation3 + $0x1], 1 }

</bundles_post_ra>
